<compile_context>
chip_gen: v7x
topology: tpu7x:2x2x1
jax: 0.10.0
libtpu: 0.0.40
codegen_flags: <defaults>
</compile_context>

<pallas_src>
import jax
import jax.numpy as jnp
from jax.experimental import pallas as pl
from jax.experimental.pallas import tpu as pltpu


def _softplus(z):
    # numerically stable log(1 + exp(z)) -- used by the pure-JAX reference
    return jnp.maximum(z, 0.0) + jnp.log1p(jnp.exp(-jnp.abs(z)))


def _block_loss(logit_ref, label_ref, cls_ref, pw_ref):
    """Elementwise BCE-with-logits loss for one (1, C, T) block."""
    x = logit_ref[...]                       # (1, C, T) f32
    lab = label_ref[...]                     # (1, 1, T) i32
    cls = cls_ref[...]                       # (1, C, 1) i32 (invalid channels = -1)
    pw = pw_ref[...]                         # (1, C, 1) f32

    tgt = (lab == cls).astype(jnp.float32)   # (1, C, T)

    # softplus(x) computed once; softplus(-x) = softplus(x) - x
    sp = jnp.maximum(x, 0.0) + jnp.log1p(jnp.exp(-jnp.abs(x)))
    pt = pw * tgt
    #   pw*tgt*softplus(-x) + (1-tgt)*softplus(x)
    # = (pw*tgt + 1 - tgt)*softplus(x) - pw*tgt*x
    return ((1.0 - tgt) + pt) * sp - pt * x


def _wbce_elem_kernel(logit_ref, label_ref, cls_ref, pw_ref, out_ref):
    out_ref[...] = _block_loss(logit_ref, label_ref, cls_ref, pw_ref)


def _wbce_sum_kernel(logit_ref, label_ref, cls_ref, pw_ref, out_ref):
    # Fused 'mean' path: out_ref is a (1,1) accumulator resident across the whole grid.
    first = jnp.logical_and(pl.program_id(0) == 0, pl.program_id(1) == 0)

    @pl.when(first)
    def _():
        out_ref[...] = jnp.zeros_like(out_ref)

    loss = _block_loss(logit_ref, label_ref, cls_ref, pw_ref)
    s = jnp.sum(loss, axis=(1, 2), keepdims=True)     # (1, 1, 1)
    out_ref[...] = out_ref[...] + s[0]


def _pick_tile(HW, C, max_tile=8192):
    """Choose a large lane tile: full HW if it fits, else a big multiple of 128."""
    # Keep the double-buffered working set (logit + out + label blocks) modest.
    budget = 8 * 1024 * 1024
    per_lane_bytes = (2 * C + 1) * 4 * 2
    cap = max(128, (budget // per_lane_bytes) // 128 * 128)
    max_tile = min(max_tile, cap)

    if HW <= max_tile:
        return HW                       # full spatial extent in one block (legal: full dim)
    t = (max_tile // 128) * 128
    while t >= 128:
        if HW % t == 0:
            return t                    # exact divisor, no padding
        t -= 128
    return (max_tile // 128) * 128      # no divisor found: pad the tail


def wbce_loss(logit, label, *, n_old_classes=0, ignore_index=255,
              pos_weight=None, reduction="none"):
    N, C, H, W = logit.shape
    HW = H * W

    tile = _pick_tile(HW, C)
    HW_pad = pl.cdiv(HW, tile) * tile
    num_tiles = HW_pad // tile

    # v7x has 2 TensorCores sharing HBM: keep >= 2 parallel blocks when possible.
    if reduction == "none" and N * num_tiles < 2 and tile % 256 == 0:
        tile //= 2
        num_tiles = HW_pad // tile

    logit3 = logit.reshape(N, C, HW).astype(jnp.float32)
    label3 = label.reshape(N, 1, HW).astype(jnp.int32)
    if HW_pad != HW:
        # Pad logits with a large negative value -> softplus underflows to exactly 0,
        # so padded elements contribute exactly zero loss (matters for the fused mean).
        logit3 = jnp.pad(logit3, ((0, 0), (0, 0), (0, HW_pad - HW)),
                         constant_values=-1e4)
        label3 = jnp.pad(label3, ((0, 0), (0, 0), (0, HW_pad - HW)),
                         constant_values=0)

    # Static per-channel data hoisted out of the kernel:
    # channel c represents class (c + n_old_classes); classes in {0, ignore_index}
    # never produce a positive target, encoded as class id -1 (never present in labels).
    cls = jnp.arange(C, dtype=jnp.int32) + n_old_classes
    valid = jnp.logical_and(cls != 0, cls != ignore_index)
    cls_id = jnp.where(valid, cls, -1).reshape(1, C, 1)

    if pos_weight is None:
        pw = jnp.ones((1, C, 1), jnp.float32)
    else:
        pw = jnp.asarray(pos_weight, jnp.float32).reshape(1, C, 1)

    in_specs = [
        pl.BlockSpec((1, C, tile), lambda n, t: (n, 0, t)),
        pl.BlockSpec((1, 1, tile), lambda n, t: (n, 0, t)),
        pl.BlockSpec((1, C, 1), lambda n, t: (0, 0, 0)),
        pl.BlockSpec((1, C, 1), lambda n, t: (0, 0, 0)),
    ]

    if reduction == "none":
        out = pl.pallas_call(
            _wbce_elem_kernel,
            out_shape=jax.ShapeDtypeStruct((N, C, HW_pad), jnp.float32),
            grid_spec=pltpu.PrefetchScalarGridSpec(
                num_scalar_prefetch=0,
                grid=(N, num_tiles),
                in_specs=in_specs,
                # lane-dense output: last dim is a multiple of 128 or the full extent
                out_specs=pl.BlockSpec((1, C, tile), lambda n, t: (n, 0, t)),
            ),
            compiler_params=pltpu.CompilerParams(
                dimension_semantics=("parallel", "parallel")),
        )(logit3, label3, cls_id, pw)
        return out[:, :, :HW].reshape(N, C, H, W)

    elif reduction == "mean":
        # Fused reduction: never materialize the (N, C, HW) loss in HBM.
        total = pl.pallas_call(
            _wbce_sum_kernel,
            out_shape=jax.ShapeDtypeStruct((1, 1), jnp.float32),
            grid_spec=pltpu.PrefetchScalarGridSpec(
                num_scalar_prefetch=0,
                grid=(N, num_tiles),
                in_specs=in_specs,
                out_specs=pl.BlockSpec((1, 1), lambda n, t: (0, 0)),
            ),
            compiler_params=pltpu.CompilerParams(
                dimension_semantics=("arbitrary", "arbitrary")),
        )(logit3, label3, cls_id, pw)
        return total[0, 0] / (N * C * HW)

    else:
        raise NotImplementedError


def _wbce_ref(logit, label, *, n_old_classes, ignore_index, pos_weight=None):
    # pure-JAX reference mirroring the PyTorch semantics (reduction='none')
    N, C, H, W = logit.shape
    cls = jnp.arange(C, dtype=jnp.int32) + n_old_classes
    valid = (cls != 0) & (cls != ignore_index)
    tgt = (label[:, None, :, :] == cls[None, :, None, None]) & valid[None, :, None, None]
    tgt = tgt.astype(jnp.float32)
    x = logit.astype(jnp.float32)
    pw = jnp.ones((C,), jnp.float32) if pos_weight is None else jnp.asarray(pos_weight)
    pw = pw[None, :, None, None]
    return pw * tgt * _softplus(-x) + (1.0 - tgt) * _softplus(x)


if __name__ == "__main__":
    key = jax.random.PRNGKey(0)
    k1, k2 = jax.random.split(key)

    N, C, H, W = 2, 4, 16, 16          # C = n_new_classes
    n_old_classes = 5
    ignore_index = 255

    logit = jax.random.normal(k1, (N, C, H, W), dtype=jnp.float32)
    # labels contain background (0), the new classes (5..8), and ignore (255)
    candidates = jnp.array([0, 5, 6, 7, 8, ignore_index], dtype=jnp.int32)
    idx = jax.random.randint(k2, (N, H, W), 0, candidates.shape[0])
    label = candidates[idx]

    ref = _wbce_ref(logit, label, n_old_classes=n_old_classes, ignore_index=ignore_index)

    # reduction='none'
    out = wbce_loss(logit, label, n_old_classes=n_old_classes,
                    ignore_index=ignore_index, pos_weight=None, reduction="none")
    out = jax.block_until_ready(out)
    assert out.shape == (N, C, H, W)
    assert jnp.allclose(out, ref, atol=1e-5, rtol=1e-5)

    # reduction='mean' (fused in-kernel reduction)
    mean_out = wbce_loss(logit, label, n_old_classes=n_old_classes,
                         ignore_index=ignore_index, pos_weight=None, reduction="mean")
    mean_out = jax.block_until_ready(mean_out)
    assert jnp.allclose(mean_out, jnp.mean(ref), atol=1e-5, rtol=1e-5)

    print("KERNEL_OK")
</pallas_src>

<mosaic_0001>
module attributes {stable_mosaic.version = 11 : i64} {
  func.func @_wbce_elem_kernel(%arg0: i32, %arg1: i32, %arg2: memref<1x4x256xf32, #tpu.memory_space<vmem>>, %arg3: memref<1x1x256xi32, #tpu.memory_space<vmem>>, %arg4: memref<1x4x1xi32, #tpu.memory_space<vmem>>, %arg5: memref<1x4x1xf32, #tpu.memory_space<vmem>>, %arg6: memref<1x4x256xf32, #tpu.memory_space<vmem>>) attributes {dimension_semantics = [#tpu.dimension_semantics<parallel>, #tpu.dimension_semantics<parallel>], iteration_bounds = array<i64: 2, 1>, scalar_prefetch = 0 : i64, scratch_operands = 0 : i64, tpu.core_type = #tpu.core_type<tc>, window_params = [{transform_indices = @transform_0, window_bounds = array<i64: 1, 4, 256>}, {transform_indices = @transform_1, window_bounds = array<i64: 1, 1, 256>}, {pipeline_mode = #tpu.pipeline_mode<synchronous>, transform_indices = @transform_2, window_bounds = array<i64: 1, 4, 1>}, {pipeline_mode = #tpu.pipeline_mode<synchronous>, transform_indices = @transform_3, window_bounds = array<i64: 1, 4, 1>}, {transform_indices = @transform_4, window_bounds = array<i64: 1, 4, 256>}]} {
    %c0 = arith.constant 0 : index
    %c0_0 = arith.constant 0 : index
    %c0_1 = arith.constant 0 : index
    %0 = vector.load %arg2[%c0, %c0_0, %c0_1] : memref<1x4x256xf32, #tpu.memory_space<vmem>>, vector<1x4x256xf32>
    %c0_2 = arith.constant 0 : index
    %c0_3 = arith.constant 0 : index
    %c0_4 = arith.constant 0 : index
    %1 = vector.load %arg3[%c0_2, %c0_3, %c0_4] : memref<1x1x256xi32, #tpu.memory_space<vmem>>, vector<1x1x256xi32>
    %c0_5 = arith.constant 0 : index
    %c0_6 = arith.constant 0 : index
    %c0_7 = arith.constant 0 : index
    %2 = vector.load %arg4[%c0_5, %c0_6, %c0_7] : memref<1x4x1xi32, #tpu.memory_space<vmem>>, vector<1x4x1xi32>
    %c0_8 = arith.constant 0 : index
    %c0_9 = arith.constant 0 : index
    %c0_10 = arith.constant 0 : index
    %3 = vector.load %arg5[%c0_8, %c0_9, %c0_10] : memref<1x4x1xf32, #tpu.memory_space<vmem>>, vector<1x4x1xf32>
    %4 = vector.broadcast %1 : vector<1x1x256xi32> to vector<1x4x256xi32>
    %5 = vector.broadcast %2 : vector<1x4x1xi32> to vector<1x4x256xi32>
    %6 = arith.cmpi eq, %4, %5 : vector<1x4x256xi32>
    %7 = arith.extui %6 : vector<1x4x256xi1> to vector<1x4x256xi32>
    %8 = arith.sitofp %7 : vector<1x4x256xi32> to vector<1x4x256xf32>
    %cst = arith.constant 0.000000e+00 : f32
    %9 = vector.broadcast %cst : f32 to vector<1x4x256xf32>
    %10 = arith.maximumf %0, %9 : vector<1x4x256xf32>
    %11 = math.absf %0 : vector<1x4x256xf32>
    %cst_11 = arith.constant 0.000000e+00 : f32
    %12 = vector.broadcast %cst_11 : f32 to vector<1x4x256xf32>
    %13 = arith.subf %12, %11 : vector<1x4x256xf32>
    %14 = math.exp %13 : vector<1x4x256xf32>
    %15 = math.log1p %14 : vector<1x4x256xf32>
    %16 = arith.addf %10, %15 : vector<1x4x256xf32>
    %17 = vector.broadcast %3 : vector<1x4x1xf32> to vector<1x4x256xf32>
    %18 = arith.mulf %17, %8 : vector<1x4x256xf32>
    %cst_12 = arith.constant 1.000000e+00 : f32
    %19 = vector.broadcast %cst_12 : f32 to vector<1x4x256xf32>
    %20 = arith.subf %19, %8 : vector<1x4x256xf32>
    %21 = arith.addf %20, %18 : vector<1x4x256xf32>
    %22 = arith.mulf %21, %16 : vector<1x4x256xf32>
    %23 = arith.mulf %18, %0 : vector<1x4x256xf32>
    %24 = arith.subf %22, %23 : vector<1x4x256xf32>
    %c0_13 = arith.constant 0 : index
    %c0_14 = arith.constant 0 : index
    %c0_15 = arith.constant 0 : index
    %25 = vector.load %arg6[%c0_13, %c0_14, %c0_15] : memref<1x4x256xf32, #tpu.memory_space<vmem>>, vector<1x4x256xf32>
    tpu.vector_store %arg6[%c0_13, %c0_14, %c0_15], %24 {strides = array<i32>} : memref<1x4x256xf32, #tpu.memory_space<vmem>>, vector<1x4x256xf32>,
    return
  }
  func.func @transform_0(%arg0: i32, %arg1: i32) -> (i32, i32, i32) {
    %c0_i32 = arith.constant 0 : i32
    %c0_i32_0 = arith.constant 0 : i32
    return %arg0, %c0_i32, %arg1 : i32, i32, i32
  }
  func.func @transform_1(%arg0: i32, %arg1: i32) -> (i32, i32, i32) {
    %c0_i32 = arith.constant 0 : i32
    %c0_i32_0 = arith.constant 0 : i32
    return %arg0, %c0_i32, %arg1 : i32, i32, i32
  }
  func.func @transform_2(%arg0: i32, %arg1: i32) -> (i32, i32, i32) {
    %c0_i32 = arith.constant 0 : i32
    %c0_i32_0 = arith.constant 0 : i32
    %c0_i32_1 = arith.constant 0 : i32
    %c0_i32_2 = arith.constant 0 : i32
    return %c0_i32, %c0_i32_0, %c0_i32_1 : i32, i32, i32
  }
  func.func @transform_3(%arg0: i32, %arg1: i32) -> (i32, i32, i32) {
    %c0_i32 = arith.constant 0 : i32
    %c0_i32_0 = arith.constant 0 : i32
    %c0_i32_1 = arith.constant 0 : i32
    %c0_i32_2 = arith.constant 0 : i32
    return %c0_i32, %c0_i32_0, %c0_i32_1 : i32, i32, i32
  }
  func.func @transform_4(%arg0: i32, %arg1: i32) -> (i32, i32, i32) {
    %c0_i32 = arith.constant 0 : i32
    %c0_i32_0 = arith.constant 0 : i32
    return %arg0, %c0_i32, %arg1 : i32, i32, i32
  }
}

</mosaic_0001>

<bundles_post_ra>
// kernel: tpu_custom_call.1
= control target key start
LH: loop header
LB: loop body
LE: loop exit
PB: predicated region body
PF: predicated region fallthrough
CT: control target
= control target key end

     0   :  { %9 = vsyncpa [#allocation3], 0  ;;  %s867_s0 = inlined_call_operand.hbm [shape: f32[2,4,256], index: 0, kind: input, shape index: {}]   ;;  %s868_s1 = inlined_call_operand.vmem [shape: s32[2,1,256], index: 1, kind: input, shape index: {}]   ;;  %s869_s2 = inlined_call_operand.vmem [shape: s32[1,4,1], index: 2, kind: input, shape index: {}]   ;;  %s870_s3 = inlined_call_operand.vmem [shape: f32[1,4,1], index: 3, kind: input, shape index: {}]   ;;  %s871_s4 = inlined_call_operand.hbm [shape: f32[2,4,256], index: 4, kind: output, shape index: {}]  }
   0x1   :  { %11 = vsyncpa [#allocation3 + $0x1], 0 }
   0x2   :  { %12 = vsyncpa [#allocation4], 0 }
   0x3   :  { %14 = vsyncpa [#allocation4 + $0x1], 0  ;;  %s680_s15 = smov 0   ;;  %s682_s16 = smov 0  }
   0x4   :  { %s684_s17 = smov 0   ;;  %s686_s18 = smov 0  }
   0x5   :  { %s688_s19 = smov 0   ;;  %s690_s20 = smov 0  }
   0x6 LB: > { %s447_s21 = sadd.s32 4294967295, %s649_s20   ;;  %s448_s22 = sadd.s32 4294967294, %s649_s20   ;;  %s649_s20 = sphi %s690_s20, %s20_s20   ;;  %s645_s19 = sphi %s688_s19, %s887_s19   ;;  %s641_s18 = sphi %s686_s18, %s886_s18   ;;  %s637_s17 = sphi %s684_s17, %s885_s17   ;;  %s633_s16 = sphi %s682_s16, %s884_s16   ;;  %s629_s15 = sphi %s680_s15, %s883_s15  }
   0x7   : > { %s32_s23 = sadd.s32 1, %s645_s19  ;;  %s41_s24 = sadd.s32 1, %s637_s17 }
   0x8   : > { %p34_p0 = scmp.ge.s32.totalorder %s32_s23, 2  ;;  %p48_p1 = scmp.ne.s32.totalorder %s637_s17, %s633_s16 }
   0x9   : > { %p49_p2 = scmp.eq.s32.totalorder %s649_s20, 0  ;;  %p54_p3 = scmp.ne.s32.totalorder %s633_s16, %s629_s15 }
   0xa   : > { %s889_s23 = smov (%p34_p0, %s32_s23), 0  ;;  %p55_p5 = scmp.eq.s32.totalorder %s447_s21, 0 }
   0xb   : > { %p721_p4 = por %p49_p2, %p48_p1  ;;  %s36_s26 = ssub.s32 %s645_s19, %s889_s23 }
   0xc   : > { %p150_p6 = scmp.eq.s32.totalorder %s447_s21, 1  ;;  %p39_p7 = scmp.eq.s32.totalorder %s36_s26, 0 }
   0xd   : > { %p727_p8 = por %p55_p5, %p54_p3  ;;  %p156_p10 = scmp.eq.s32.totalorder %s448_s22, 1 }
   0xe   : > { %p731_p9 = por %p150_p6, %p48_p1  ;;  %p479_p13 = scmp.lt.s32.totalorder %s649_s20, 2 }
   0xf   : > { %s736_s29 = scalar_select %p39_p7, %s637_s17, %s41_s24  }
  0x10   : > { %s875_s28 = scalar_select %p731_p9, 1, 0 }
  0x11   : > { %p738_p11 = por %p156_p10, %p54_p3  ;;  %s182_s5 = sand.u32 1, %s637_s17  }
  0x12   : > { %s451_s6 = sshll.u32 %s182_s5, 3  ;;  %s465_s7 = sshll.u32 %s645_s19, 7 }
  0x13   : > { %s876_s30 = scalar_select %p738_p11, 1, 0 }
  0x14   : > { %s749_s10 = scalar_lea.hbm %s867_s0, %s465_s7  ;;  %s186_s11 = scalar_lea.vmem [#allocation2], %s451_s6 }
  0x15   : > { %s196_s12 = sshll.u32 %s186_s11, 4  ;;  %p755_p0 = pnand %p479_p13, %p721_p4  ;;  %s751_s12 = int_to_ptr.vmem [resolvable:$true] %s196_s12 }
  0x16   : > { %s183_s14 = scalar_lea.sflag [#allocation3], %s182_s5  ;;  %s537_s21 = scalar_lea.hbm %s749_s10, 128 }
  0x17   : > { %p538_p3 = scmp.ne.s32.totalorder %s749_s10, %s537_s21  ;;  %p539_p5 = pneg %p755_p0 }
  0x18   : > { %s542_s25 = scalar_lea.hbm %s867_s0, 256  ;;  %p543_p4 = scmp.lt.u32.totalorder %s749_s10, %s867_s0 }
  0x19   : > { %p540_p6 = pnand %p539_p5, %p538_p3  ;;  %p544_p10 = scmp.lt.u32.totalorder %s542_s25, %s537_s21 }
  0x1a   : > { %p546_p12 = scmp.lt.u32.totalorder %s537_s21, %s749_s10 }
  0x1b   : > { %p541_p7 = pneg %p540_p6  ;;  %p545_p13 = por %p544_p10, %p543_p4 }
  0x1d   : > { %p547_p1 = por %p546_p12, %p545_p13 }
  0x1f   : > { %p548_p2 = pnand %p547_p1, %p541_p7 }
  0x21   : > { %551 = shalt.err (!%p548_p2)
}
  0x22   : > { %s552_s5 = scalar_lea.vmem %s751_s12, 128  ;;  %s651_s7 = smov [#allocation2]  }
  0x23   : > { %p553_p3 = scmp.ne.s32.totalorder %s751_s12, %s552_s5  ;;  %s557_s8 = sshll.u32 %s651_s7, 4  ;;  %s558_s8 = int_to_ptr.vmem [resolvable:$false] %s557_s8 }
  0x24   : > { %s559_s9 = scalar_lea.vmem %s558_s8, 256  ;;  %p560_p9 = scmp.lt.s32.totalorder %s751_s12, %s558_s8 }
  0x25   : > { %p555_p6 = pnand %p553_p3, %p539_p5  ;;  %p561_p4 = scmp.lt.s32.totalorder %s559_s9, %s552_s5 }
  0x27   : > { %p556_p11 = pneg %p555_p6  ;;  %p562_p10 = por %p561_p4, %p560_p9 }
  0x29   : > { %p563_p12 = pnand %p562_p10, %p556_p11 }
  0x2b   : > { %566 = shalt.err (!%p563_p12)
}
  0x2c   : > { %474 = dma.hbm_to_vmem [thread:$0]  (!%p755_p0), %s749_s10, 128, %s751_s12, %s183_s14  }
  0x2d   : > { %p878_p1 = scmp.lt.s32.totalorder %s649_s20, 3  ;;  %p879_p2 = scmp.ge.s32.totalorder %s649_s20, 1 }
  0x2f   : > { %p214_p5 = pnand %p879_p2, %p878_p1 }
  0x30   : > { %s791_s11 = sand.u32 (!%p214_p5), 1, %s633_s16  }
  0x31   : > { %217 = sbr.rel (%p214_p5) target bundleno = 215 (0xd7), region = 36  ;;  %s455_s21 = sshll.u32 (!%p214_p5), %s791_s11, 3 }
  0x32   : > { %s220_s22 = scalar_lea.sflag (!%p214_p5), [#allocation3], %s791_s11  ;;  %s223_s13 = scalar_lea.vmem (!%p214_p5), [#allocation2], %s455_s21 }
  0x38   : > { %620 = dma.done.wait (%p727_p8), %s220_s22, 128  }
  0x39   : > { %622 = vsyncadd (%p727_p8), %s220_s22, 4294967168  ;;  %v652_v0 = vmov 0   ;;  %v269_v1 = vld [vmem:[%s869_s2] sm:$0xf]  ;;  %p258_p8 = scmp.lt.s32.totalorder %s641_s18, 1  ;;  %v271_v9 = vlaneseq  ;;  %v653_v26 = vmov 0.0  }
  0x3a   : > { %531 = vset.pattern.permute.xlu0 %v652_v0  ;;  %v270_v2 = vld [vmem:[%s870_s3] sm:$0xf]  ;;  %s466_s7 = sshll.u32 %s641_s18, 7  ;;  %s255_s8 = scalar_lea.vmem [#allocation5], %s455_s21 }
  0x3b   : > { %280 = vperm.xlu0 %531, %v269_v1   ;;  %v267_v3 = vld [vmem:[%s223_s13] sm:$0xff]  ;;  %s259_s27 = scalar_select %p258_p8, %s641_s18, 1  ;;  %v272_v11 = vshrl.u32 %v271_v9, 7 }
  0x3c   : > { %v289_v4 = vand.u32 2147483647, %v267_v3  ;;  %v288_v20 = vmax.f32 %v267_v3, 0.0  ;;  %v320_v31 = vcombine.high %v267_v3, %v267_v3  ;;  %s348_s9 = sshll.u32 %s255_s8, 4  ;;  %s818_s10 = scalar_lea.hbm %s871_s4, %s466_s7  ;;  %s820_s9 = int_to_ptr.vmem [resolvable:$true] %s348_s9 }
  0x3d   : > { %s457_s25 = sshll.u32 %s259_s27, 1  ;;  %v273_v15 = vsub.s32 0, %v272_v11  ;;  %v277_v16 = vsub.s32 1, %v272_v11  ;;  %s332_s12 = scalar_lea.sflag [#allocation4], %s791_s11 }
  0x3e   : > { %v290_v5 = vsub.f32 0.0, %v289_v4  ;;  %s264_s5 = scalar_lea.vmem %s868_s1, %s457_s25  ;;  %s567_s14 = scalar_lea.vmem %s820_s9, 128 }
  0x3f   : > { %305 = vperm.xlu0 %531, %v270_v2   ;;  %v268_v19 = vld [vmem:[%s264_s5] sm:$0x3]  ;;  %p568_p9 = scmp.ne.s32.totalorder %s820_s9, %s567_s14  ;;  %p880_p11 = scmp.ne.s32.totalorder %s875_s28, 0 }
  0x40   : > { %v291_v6 = vmul.f32 1.442695, %v290_v5  ;;  %v274_v21 = vrot.slane %v268_v19, %v273_v15  ;;  %v278_v22 = vrot.slane %v268_v19, %v277_v16  ;;  %s654_s18 = smov [#allocation5]  }
  0x41   : > { %p569_p0 = pnand %p568_p9, %p880_p11  ;;  %s571_s21 = sshll.u32 %s654_s18, 4  ;;  %s572_s21 = int_to_ptr.vmem [resolvable:$false] %s571_s21 }
  0x42   : > { %533 = vpow2.f32 %v291_v6  ;;  %s573_s24 = scalar_lea.vmem %s572_s21, 256  ;;  %p574_p13 = scmp.lt.s32.totalorder %s820_s9, %s572_s21 }
  0x43   : > { %p570_p7 = pneg %p569_p0  ;;  %p575_p3 = scmp.lt.s32.totalorder %s573_s24, %s567_s14 }
  0x45   : > { %p576_p6 = por %p575_p3, %p574_p13 }
  0x47   : > { %p577_p4 = pnand %p576_p6, %p570_p7 }
  0x4c   : > { %v534_v7 = vpop.eup %533 }
  0x4d   : > { %v293_v8 = vadd.f32 1.0, %v534_v7  ;;  %v296_v10 = vmul.f32 -0.5, %v534_v7  ;;  %v299_v14 = vand.u32 2147483647, %v534_v7 }
  0x4f   : > { %535 = vlog2.f32 %v293_v8  ;;  %v297_v12 = vadd.f32 1.0, %v296_v10  ;;  %vm300_vm0 = vcmp.lt.f32.partialorder %v299_v14, 0.0004427343 }
  0x51   : > { %v298_v18 = vmul.f32 %v534_v7, %v297_v12 }
  0x59   : > { %v536_v13 = vpop.eup %535 }
  0x5a   : > { %v295_v17 = vmul.f32 0.6931472, %v536_v13 }
  0x5c   : > { %v301_v23 = vsel %vm300_vm0, %v298_v18, %v295_v17 }
  0x5d   : > { %v302_v25 = vadd.f32 %v301_v23, %v288_v20 }
  0x5f   : > { %v315_v30 = vcombine.high %v302_v25, %v302_v25 }
  0xba   : > { %v281_v24 = vpop.permute.xlu0 %280 }
  0xbb   : > { %vm282_vm1 = vcmp.eq.s32.totalorder %v274_v21, %v281_v24  ;;  %vm283_vm2 = vcmp.eq.s32.totalorder %v278_v22, %v281_v24 }
  0xbc   : > { %v458_v27 = vsel %vm282_vm1, 1.0, %v653_v26  ;;  %v459_v28 = vsel %vm283_vm2, 1.0, %v653_v26 }
  0xbd   : > { %v310_v34 = vsub.f32 1.0, %v458_v27  ;;  %v311_v35 = vsub.f32 1.0, %v459_v28 }
  0xbe   : > { %v306_v29 = vpop.permute.xlu0 %305 }
  0xbf   : > { %v308_v32 = vmul.f32 %v458_v27, %v306_v29  ;;  %v309_v33 = vmul.f32 %v459_v28, %v306_v29 }
  0xc1   : > { %v312_v36 = vadd.f32 %v310_v34, %v308_v32  ;;  %v313_v37 = vadd.f32 %v311_v35, %v309_v33  ;;  %v322_v40 = vmul.f32 %v308_v32, %v267_v3  ;;  %v323_v41 = vmul.f32 %v320_v31, %v309_v33 }
  0xc3   : > { %v317_v38 = vmul.f32 %v312_v36, %v302_v25  ;;  %v318_v39 = vmul.f32 %v315_v30, %v313_v37 }
  0xc5   : > { %v324_v42 = vsub.f32 %v317_v38, %v322_v40  ;;  %v325_v43 = vsub.f32 %v318_v39, %v323_v41 }
  0xc7   : > { %v328_v44 = vcombine.low %v324_v42, %v325_v43 }
  0xc9   : > { %330 = vst [vmem:[%s255_s8] sm:$0xff] %v328_v44 }
  0xca   : > { %580 = shalt.err (!%p577_p4)
}
  0xcb   : > { %s581_s11 = scalar_lea.hbm %s818_s10, 128  ;;  %s585_s26 = scalar_lea.hbm %s871_s4, 256 }
  0xcc   : > { %p582_p10 = scmp.ne.s32.totalorder %s818_s10, %s581_s11  ;;  %p586_p2 = scmp.lt.u32.totalorder %s818_s10, %s871_s4 }
  0xcd   : > { %p587_p5 = scmp.lt.u32.totalorder %s585_s26, %s581_s11  ;;  %p589_p9 = scmp.lt.u32.totalorder %s581_s11, %s818_s10 }
  0xce   : > { %p583_p12 = pnand %p582_p10, %p880_p11 }
  0xcf   : > { %p588_p8 = por %p587_p5, %p586_p2 }
  0xd0   : > { %p584_p1 = pneg %p583_p12 }
  0xd1   : > { %p590_p0 = por %p589_p9, %p588_p8 }
  0xd3   : > { %p591_p7 = pnand %p590_p0, %p584_p1 }
  0xd5   : > { %594 = shalt.err (!%p591_p7)
}
  0xd6   : > { %469 = dma.vmem_to_hbm [thread:$0]  (%p880_p11), %s820_s9, 128, %s818_s10, %s332_s12  }
  0xd7 PF: > { %s360_s7 = sand.u32 1, %s629_s15   ;;  %p881_p13 = scmp.ne.s32.totalorder %s876_s30, 0 }
  0xd8   : > { %p882_p3 = scmp.ge.s32.totalorder %s649_s20, 2  ;;  %s361_s8 = scalar_lea.sflag [#allocation4], %s360_s7 }
  0xda   : > { %p476_p6 = pnand %p882_p3, %p881_p13 }
  0xdc   : > { %624 = dma.done.wait (!%p476_p6), %s361_s8, 128  }
  0xdd   : > { %626 = vsyncadd (!%p476_p6), %s361_s8, 4294967168  ;;  %s20_s20 = sadd.s32 1, %s649_s20   ;;  %s883_s15 = smov %s633_s16 }
  0xde   : > { %p17_p4 = scmp.ge.s32.totalorder %s20_s20, 4   ;;  %s884_s16 = smov %s637_s17 }
  0xdf   : > { %s885_s17 = smov %s736_s29  ;;  %s886_s18 = smov %s645_s19 }
  0xe0   : > { %s887_s19 = smov %s889_s23  ;;  %19 = sbr.rel (!%p17_p4) target bundleno = 6 (0x6), region = 84 }
  0xe7   :  { %366 = vsyncpa [#allocation3], 1 }
  0xe8   :  { %368 = vsyncpa [#allocation3 + $0x1], 1 }
  0xe9   :  { %369 = vsyncpa [#allocation4], 1 }
  0xea   :  { %371 = vsyncpa [#allocation4 + $0x1], 1 }

</bundles_post_ra>
